<compile_context>
chip_gen: v6e
topology: v6e:2x2x1
jax: 0.10.0
libtpu: 0.0.40
codegen_flags: <defaults>
</compile_context>

<pallas_src>
import jax
import jax.numpy as jnp
from jax.experimental import pallas as pl
from jax.experimental.pallas import tpu as pltpu


def _mclass_ce_kernel(pred_ref, label_ref, out_ref, acc_ref):
    """Grid = (parallel_chunk, batch_tile). One step handles a (tile_n, C) slab."""
    i = pl.program_id(1)  # inner (reduction over batch tiles) axis

    @pl.when(i == 0)
    def _():
        acc_ref[...] = jnp.zeros_like(acc_ref)

    x = pred_ref[...].astype(jnp.float32)     # (tile_n, C)
    y = label_ref[...].astype(jnp.float32)    # (tile_n, C)

    # Numerically stable log-sum-exp per row; avoid forming log_softmax:
    #   -sum((x - lse) * y) = lse * rowsum(y) - rowsum(x * y)
    m = jnp.max(x, axis=-1, keepdims=True)                              # (tile_n, 1)
    lse = m + jnp.log(jnp.sum(jnp.exp(x - m), axis=-1, keepdims=True))  # (tile_n, 1)
    y_sum = jnp.sum(y, axis=-1, keepdims=True)                          # (tile_n, 1)
    xy_sum = jnp.sum(x * y, axis=-1, keepdims=True)                     # (tile_n, 1)

    acc_ref[...] += lse * y_sum - xy_sum

    @pl.when(i == pl.num_programs(1) - 1)
    def _():
        out_ref[0, 0] = jnp.sum(acc_ref[...])


def _pick_tile_n(n, c, in_itemsize, sublane, budget_bytes):
    # Double-buffered input blocks (2 inputs x 2 buffers) + ~3 live f32 temps.
    per_row = 4 * c * in_itemsize + 3 * c * 4
    rows = max(sublane, budget_bytes // per_row)
    rows = (rows // sublane) * sublane
    rows = min(rows, 2048)                      # amortizes ~0.35us/step overhead
    n_ceil = ((n + sublane - 1) // sublane) * sublane
    return max(sublane, min(rows, n_ceil))


def mclass_cross_entropy_loss(predicts, labels, *, tile_n=None,
                              vmem_block_budget_bytes=16 << 20):
    """Pallas implementation of MclassCrossEntropyLoss.forward (2-D inputs)."""
    assert predicts.shape == labels.shape and predicts.ndim == 2
    n, c = predicts.shape

    p_item = jnp.dtype(predicts.dtype).itemsize
    l_item = jnp.dtype(labels.dtype).itemsize
    min_item = min(p_item, l_item)
    sublane = max(8, 32 // max(1, min_item))    # 8 for f32, 16 for bf16, 32 for 8-bit

    if tile_n is None:
        tile_n = _pick_tile_n(n, c, max(p_item, l_item), sublane,
                              vmem_block_budget_bytes)
    tile_n = max(sublane, (int(tile_n) // sublane) * sublane)

    total_steps = pl.cdiv(n, tile_n)
    num_parallel = 2 if total_steps >= 2 else 1   # v7x: one chunk per TensorCore
    steps_per_core = pl.cdiv(total_steps, num_parallel)
    n_padded = num_parallel * steps_per_core * tile_n

    if n_padded != n:
        pad = n_padded - n
        # Zero labels => padded rows contribute exactly 0 to the loss sum.
        predicts = jnp.pad(predicts, ((0, pad), (0, 0)))
        labels = jnp.pad(labels, ((0, pad), (0, 0)))

    # Explicit scoped-VMEM limit: double-buffered input blocks + f32 temps
    # + lane-padded scratch + headroom, clamped to what every generation has.
    block_bytes = 2 * tile_n * c * (p_item + l_item)
    temp_bytes = 3 * tile_n * c * 4
    scratch_bytes = tile_n * 128 * 4
    vmem_limit = block_bytes + temp_bytes + scratch_bytes + (4 << 20)
    vmem_limit = int(min(max(vmem_limit, 16 << 20), 64 << 20))

    def row_map(p, i):
        return (p * steps_per_core + i, 0)

    partials = pl.pallas_call(
        _mclass_ce_kernel,
        out_shape=jax.ShapeDtypeStruct((num_parallel, 1), jnp.float32),
        grid_spec=pltpu.PrefetchScalarGridSpec(
            num_scalar_prefetch=0,
            grid=(num_parallel, steps_per_core),
            in_specs=[
                pl.BlockSpec((tile_n, c), row_map),
                pl.BlockSpec((tile_n, c), row_map),
            ],
            out_specs=pl.BlockSpec((1, 1), lambda p, i: (p, 0),
                                   memory_space=pltpu.SMEM),
            scratch_shapes=[pltpu.VMEM((tile_n, 1), jnp.float32)],
        ),
        compiler_params=pltpu.CompilerParams(
            dimension_semantics=("parallel", "arbitrary"),
            vmem_limit_bytes=vmem_limit,
        ),
    )(predicts, labels)

    # Mean over the ORIGINAL batch size (cheap glue in plain JAX).
    return jnp.sum(partials) / jnp.float32(n)


def _reference(predicts, labels):
    log_sm = jax.nn.log_softmax(predicts.astype(jnp.float32), axis=1)
    return -jnp.sum(log_sm * labels.astype(jnp.float32)) / predicts.shape[0]


if __name__ == "__main__":
    key = jax.random.PRNGKey(0)
    k1, k2, k3, k4 = jax.random.split(key, 4)

    # Test 1: small (batch, num_classes), single grid step.
    N, C = 8, 32
    predicts = jax.random.normal(k1, (N, C), dtype=jnp.float32)
    labels = jax.nn.softmax(jax.random.normal(k2, (N, C), dtype=jnp.float32), axis=1)
    loss = jax.block_until_ready(mclass_cross_entropy_loss(predicts, labels))
    ref = _reference(predicts, labels)
    assert jnp.allclose(loss, ref, rtol=1e-5, atol=1e-5), (loss, ref)

    # Test 2: exercises padding, the 2-way parallel split, and the multi-step
    # VMEM accumulator path (explicit small tile to force several grid steps).
    N2, C2 = 136, 96
    predicts2 = jax.random.normal(k3, (N2, C2), dtype=jnp.float32)
    labels2 = jax.nn.softmax(jax.random.normal(k4, (N2, C2), dtype=jnp.float32), axis=1)
    loss2 = jax.block_until_ready(
        mclass_cross_entropy_loss(predicts2, labels2, tile_n=8))
    ref2 = _reference(predicts2, labels2)
    assert jnp.allclose(loss2, ref2, rtol=1e-5, atol=1e-5), (loss2, ref2)

    print("KERNEL_OK")
</pallas_src>

<mosaic_0001>
module attributes {stable_mosaic.version = 11 : i64} {
  func.func @_mclass_ce_kernel(%arg0: i32, %arg1: i32, %arg2: memref<8x32xf32, #tpu.memory_space<vmem>>, %arg3: memref<8x32xf32, #tpu.memory_space<vmem>>, %arg4: memref<1x1xf32, #tpu.memory_space<smem>>, %arg5: memref<8x1xf32, #tpu.memory_space<vmem>>) attributes {dimension_semantics = [#tpu.dimension_semantics<parallel>, #tpu.dimension_semantics<arbitrary>], iteration_bounds = array<i64: 1, 1>, scalar_prefetch = 0 : i64, scratch_operands = 1 : i64, tpu.core_type = #tpu.core_type<tc>, window_params = [{transform_indices = @transform_0, window_bounds = array<i64: 8, 32>}, {transform_indices = @transform_1, window_bounds = array<i64: 8, 32>}, {transform_indices = @transform_2, window_bounds = array<i64: 1, 1>}]} {
    %c0_i32 = arith.constant 0 : i32
    %0 = arith.cmpi eq, %arg1, %c0_i32 : i32
    %1 = arith.extui %0 : i1 to i32
    %c0_i32_0 = arith.constant 0 : i32
    %2 = arith.cmpi ne, %1, %c0_i32_0 : i32
    scf.if %2 {
      %cst_13 = arith.constant 0.000000e+00 : f32
      %27 = vector.broadcast %cst_13 : f32 to vector<8x1xf32>
      %c0_14 = arith.constant 0 : index
      %c0_15 = arith.constant 0 : index
      %28 = vector.load %arg5[%c0_14, %c0_15] : memref<8x1xf32, #tpu.memory_space<vmem>>, vector<8x1xf32>
      tpu.vector_store %arg5[%c0_14, %c0_15], %27 {strides = array<i32>} : memref<8x1xf32, #tpu.memory_space<vmem>>, vector<8x1xf32>,
    } else {
    }
    %c0 = arith.constant 0 : index
    %c0_1 = arith.constant 0 : index
    %3 = vector.load %arg2[%c0, %c0_1] : memref<8x32xf32, #tpu.memory_space<vmem>>, vector<8x32xf32>
    %c0_2 = arith.constant 0 : index
    %c0_3 = arith.constant 0 : index
    %4 = vector.load %arg3[%c0_2, %c0_3] : memref<8x32xf32, #tpu.memory_space<vmem>>, vector<8x32xf32>
    %cst = arith.constant dense<0xFF800000> : vector<8xf32>
    %5 = vector.multi_reduction <maximumf>, %3, %cst [1] : vector<8x32xf32> to vector<8xf32>
    %6 = vector.shape_cast %5 : vector<8xf32> to vector<8x1xf32>
    %7 = vector.broadcast %6 : vector<8x1xf32> to vector<8x32xf32>
    %8 = arith.subf %3, %7 : vector<8x32xf32>
    %9 = math.exp %8 : vector<8x32xf32>
    %cst_4 = arith.constant dense<0.000000e+00> : vector<8xf32>
    %10 = vector.multi_reduction <add>, %9, %cst_4 [1] : vector<8x32xf32> to vector<8xf32>
    %11 = vector.shape_cast %10 : vector<8xf32> to vector<8x1xf32>
    %12 = math.log %11 : vector<8x1xf32>
    %13 = arith.addf %6, %12 : vector<8x1xf32>
    %cst_5 = arith.constant dense<0.000000e+00> : vector<8xf32>
    %14 = vector.multi_reduction <add>, %4, %cst_5 [1] : vector<8x32xf32> to vector<8xf32>
    %15 = vector.shape_cast %14 : vector<8xf32> to vector<8x1xf32>
    %16 = arith.mulf %3, %4 : vector<8x32xf32>
    %cst_6 = arith.constant dense<0.000000e+00> : vector<8xf32>
    %17 = vector.multi_reduction <add>, %16, %cst_6 [1] : vector<8x32xf32> to vector<8xf32>
    %18 = vector.shape_cast %17 : vector<8xf32> to vector<8x1xf32>
    %c0_7 = arith.constant 0 : index
    %c0_8 = arith.constant 0 : index
    %19 = vector.load %arg5[%c0_7, %c0_8] : memref<8x1xf32, #tpu.memory_space<vmem>>, vector<8x1xf32>
    %20 = arith.mulf %13, %15 : vector<8x1xf32>
    %21 = arith.subf %20, %18 : vector<8x1xf32>
    %22 = arith.addf %19, %21 : vector<8x1xf32>
    %c0_9 = arith.constant 0 : index
    %c0_10 = arith.constant 0 : index
    %23 = vector.load %arg5[%c0_9, %c0_10] : memref<8x1xf32, #tpu.memory_space<vmem>>, vector<8x1xf32>
    tpu.vector_store %arg5[%c0_9, %c0_10], %22 {strides = array<i32>} : memref<8x1xf32, #tpu.memory_space<vmem>>, vector<8x1xf32>,
    %c0_i32_11 = arith.constant 0 : i32
    %24 = arith.cmpi eq, %arg1, %c0_i32_11 : i32
    %25 = arith.extui %24 : i1 to i32
    %c0_i32_12 = arith.constant 0 : i32
    %26 = arith.cmpi ne, %25, %c0_i32_12 : i32
    scf.if %26 {
      %c0_13 = arith.constant 0 : index
      %c0_14 = arith.constant 0 : index
      %27 = vector.load %arg5[%c0_13, %c0_14] : memref<8x1xf32, #tpu.memory_space<vmem>>, vector<8x1xf32>
      %28 = vector.shape_cast %27 : vector<8x1xf32> to vector<1x8x1xf32>
      %cst_15 = arith.constant dense<0.000000e+00> : vector<1xf32>
      %29 = vector.multi_reduction <add>, %28, %cst_15 [1, 2] : vector<1x8x1xf32> to vector<1xf32>
      %30 = vector.shape_cast %29 : vector<1xf32> to vector<1x1x1xf32>
      %31 = vector.extract %30[0, 0, 0] : f32 from vector<1x1x1xf32>
      %c0_16 = arith.constant 0 : index
      %c0_17 = arith.constant 0 : index
      %32 = memref.load %arg4[%c0_16, %c0_17] : memref<1x1xf32, #tpu.memory_space<smem>>
      memref.store %31, %arg4[%c0_16, %c0_17] : memref<1x1xf32, #tpu.memory_space<smem>>
    } else {
    }
    return
  }
  func.func @transform_0(%arg0: i32, %arg1: i32) -> (i32, i32) {
    %c1_i32 = arith.constant 1 : i32
    %0 = arith.muli %arg0, %c1_i32 : i32
    %1 = arith.addi %0, %arg1 : i32
    %c0_i32 = arith.constant 0 : i32
    %c0_i32_0 = arith.constant 0 : i32
    return %1, %c0_i32 : i32, i32
  }
  func.func @transform_1(%arg0: i32, %arg1: i32) -> (i32, i32) {
    %c1_i32 = arith.constant 1 : i32
    %0 = arith.muli %arg0, %c1_i32 : i32
    %1 = arith.addi %0, %arg1 : i32
    %c0_i32 = arith.constant 0 : i32
    %c0_i32_0 = arith.constant 0 : i32
    return %1, %c0_i32 : i32, i32
  }
  func.func @transform_2(%arg0: i32, %arg1: i32) -> (i32, i32) {
    %c0_i32 = arith.constant 0 : i32
    %c0_i32_0 = arith.constant 0 : i32
    return %arg0, %c0_i32 : i32, i32
  }
}

</mosaic_0001>

<bundles_post_ra>
// kernel: tpu_custom_call.1
= control target key start
LH: loop header
LB: loop body
LE: loop exit
PB: predicated region body
PF: predicated region fallthrough
CT: control target
= control target key end

     0   :  { %7 = vsyncpa [#allocation4], 0  ;;  %s204_s0 = inlined_call_operand.hbm [shape: f32[8,32], index: 0, kind: input, shape index: {}]   ;;  %s205_s1 = inlined_call_operand.hbm [shape: f32[8,32], index: 1, kind: input, shape index: {}]   ;;  %s206_s2 = inlined_call_operand.hbm [shape: f32[1,1], index: 2, kind: output, shape index: {}]  }
   0x1   :  { %8 = vsyncpa [#allocation7], 0 }
   0x2   :  { %9 = vsyncpa [#allocation5], 0  ;;  %s173_s9 = smov [#allocation3]   ;;  %s174_s11 = smov [#allocation6]  }
   0x3   :  { %s19_s10 = sshll.u32 %s173_s9, 4  ;;  %s32_s12 = sshll.u32 %s174_s11, 4  ;;  %s20_s10 = int_to_ptr.vmem [resolvable:$true] %s19_s10  ;;  %s33_s12 = int_to_ptr.vmem [resolvable:$true] %s32_s12 }
   0x4   :  { %s127_s13 = scalar_lea.vmem %s20_s10, 128  ;;  %p132_p1 = scmp.lt.s32.totalorder %s20_s10, %s20_s10 }
   0x5   :  { %p128_p0 = scmp.ne.s32.totalorder %s20_s10, %s127_s13  ;;  %p133_p2 = scmp.lt.s32.totalorder %s127_s13, %s127_s13 }
   0x7   :  { %p134_p3 = por %p133_p2, %p132_p1 }
   0x9   :  { %p135_p4 = pnand %p134_p3, %p128_p0 }
   0xb   :  { %138 = shalt.err (!%p135_p4)
}
   0xc   :  { %22 = dma.hbm_to_vmem [thread:$0]  %s204_s0, 128, %s20_s10, [#allocation4]  }
   0xd   :  { %s147_s16 = scalar_lea.vmem %s33_s12, 128  ;;  %p152_p6 = scmp.lt.s32.totalorder %s33_s12, %s33_s12 }
   0xe   :  { %p148_p5 = scmp.ne.s32.totalorder %s33_s12, %s147_s16  ;;  %p153_p7 = scmp.lt.s32.totalorder %s147_s16, %s147_s16 }
  0x10   :  { %p154_p8 = por %p153_p7, %p152_p6 }
  0x12   :  { %p155_p9 = pnand %p154_p8, %p148_p5 }
  0x14   :  { %158 = shalt.err (!%p155_p9)
}
  0x15   :  { %35 = dma.hbm_to_vmem [thread:$0]  %s205_s1, 128, %s33_s12, [#allocation7]  }
  0x16   :  { %167 = dma.done.wait [#allocation4], 128  }
  0x17   :  { %168 = vsyncadd [#allocation4], 4294967168 }
  0x18   :  { %169 = dma.done.wait [#allocation7], 128  }
  0x19   :  { %170 = vsyncadd [#allocation7], 4294967168  ;;  %vm52_vm0 = vcmask 261120   ;;  %v50_v0 = vld [vmem:[#allocation3] sm:$0xff]  ;;  %v51_v2 = vld [vmem:[#allocation6] sm:$0xff]  ;;  %vm48_vm1 = vcmask 7168  }
  0x1a   :  { %v53_v1 = vsel %vm52_vm0, %v50_v0, -inf  ;;  %v65_v3 = vsel %vm52_vm0, %v51_v2, 0.0  ;;  %v68_v4 = vmul.f32 %v51_v2, %v50_v0  ;;  %v175_v11 = vmov 0.0   ;;  %s176_s1 = smov [#allocation8]  }
  0x1b   :  { %54 = vmax.xlane.f32.xlu0 %v53_v1  ;;  %66 = vadd.xlane.f32.xlu1 %v65_v3  ;;  %49 = vst.msk [vmem:[#allocation2] sm:$0xff] %vm48_vm1, %v175_v11 }
  0x1c   :  { %v69_v5 = vsel %vm52_vm0, %v68_v4, 0.0 }
  0x1f   :  { %70 = vadd.xlane.f32.xlu1 %v69_v5 }
  0x22   :  { %v72_v19 = vld [vmem:[#allocation2] sm:$0xff] }
  0xa4   :  { %v55_v6 = vpop.xlane.xlu0 %54  ;;  %v67_v13 = vpop.xlane.xlu1 %66 }
  0xa5   :  { %v56_v7 = vsub.f32 %v50_v0, %v55_v6 }
  0xa7   :  { %v57_v8 = vmul.f32 1.442695, %v56_v7 }
  0xa8   :  { %v71_v17 = vpop.xlane.xlu1 %70 }
  0xa9   :  { %115 = vpow2.f32 %v57_v8 }
  0xb6   :  { %v116_v9 = vpop.eup %115 }
  0xb7   :  { %v59_v10 = vsel %vm52_vm0, %v116_v9, 0.0 }
  0xb8   :  { %60 = vadd.xlane.f32.xlu0 %v59_v10 }
 0x141   :  { %v61_v12 = vpop.xlane.xlu0 %60 }
 0x142   :  { %117 = vlog2.f32 %v61_v12 }
 0x14f   :  { %v118_v14 = vpop.eup %117 }
 0x150   :  { %v63_v15 = vmul.f32 0.6931472, %v118_v14 }
 0x152   :  { %v64_v16 = vadd.f32 %v63_v15, %v55_v6 }
 0x154   :  { %v73_v18 = vmul.f32 %v67_v13, %v64_v16 }
 0x156   :  { %v74_v20 = vsub.f32 %v73_v18, %v71_v17 }
 0x158   :  { %v75_v21 = vadd.f32 %v74_v20, %v72_v19 }
 0x15a   :  { %77 = vst.msk [vmem:[#allocation2] sm:$0xff] %vm48_vm1, %v75_v21 }
 0x161   :  { %v81_v22 = vld [vmem:[#allocation2] sm:$0xff] }
 0x162   :  { %v82_v23 = vsel %vm48_vm1, %v81_v22, 0.0 }
 0x163   :  { %83 = vadd.xlane.f32.xlu0 %v82_v23 }
 0x1ec   :  { %v84_v24 = vpop.xlane.xlu0 %83 }
 0x1ed   :  { %v85_v25 = vrot.slane %v84_v24, 4 }
 0x1ef   :  { %v86_v26 = vadd.f32 %v85_v25, %v84_v24 }
 0x1f1   :  { %v87_v27 = vrot.slane %v86_v26, 2 }
 0x1f3   :  { %v88_v28 = vadd.f32 %v87_v27, %v86_v26 }
 0x1f5   :  { %v89_v29 = vrot.slane %v88_v28, 1 }
 0x1f7   :  { %v90_v30 = vadd.f32 %v89_v29, %v88_v28 }
 0x1f9   :  { %109 = vpush %v90_v30 }
 0x22a   :  { %s110_s0 = spop %109 }
 0x22b   :  { %93 = sst [smem:[#allocation8]] %s110_s0 }
 0x22c   :  { %101 = dma.smem_to_hbm %s176_s1, 16, %s206_s2, [#allocation5]  }
 0x22d   :  { %171 = dma.done.wait [#allocation5], 16  }
 0x22e   :  { %172 = vsyncadd [#allocation5], 4294967280 }
 0x22f   :  { %105 = sfence }
 0x230   :  { %106 = vsyncpa [#allocation4], 1 }
 0x231   :  { %107 = vsyncpa [#allocation7], 1 }
 0x232   :  { %108 = vsyncpa [#allocation5], 1 }

</bundles_post_ra>
